<compile_context>
chip_gen: v7x
topology: tpu7x:2x2x1
jax: 0.10.0
libtpu: 0.0.40
codegen_flags: <defaults>
</compile_context>

<pallas_src>
import functools

import jax
import jax.numpy as jnp
from jax.experimental import pallas as pl
from jax.experimental.pallas import tpu as pltpu

_BN_EPS = 1e-5
_LANE = 128
_VMEM_LIMIT = 32 * 1024 * 1024  # safe on v5e/v6e (128 MiB) and v7x (64 MiB)


def _round_up(n, m):
    return ((n + m - 1) // m) * m


def _pick_block_rows(batch, requested=None):
    """Batch tile size. Batch is padded up to a multiple of it, so any multiple
    of 8 is legal; big tiles amortize the ~0.35 us per-grid-step overhead."""
    if requested is not None:
        if requested <= 0 or requested % 8 != 0:
            raise ValueError(f"block_rows={requested} must be a positive multiple of 8")
        return requested
    if batch >= 4096:
        return 2048
    if batch >= 512:
        # Two tiles so both TensorCores get work on v7x megacore.
        return _round_up((batch + 1) // 2, 128)
    return _round_up(max(batch, 8), 8)  # single full-extent tile


def _pad_weight(w, *, pad_in, pad_out):
    din, dout = w.shape
    pi = (_round_up(din, _LANE) - din) if pad_in else 0
    po = (_round_up(dout, _LANE) - dout) if pad_out else 0
    return jnp.pad(w.astype(jnp.float32), ((0, pi), (0, po)))


def _pad_bias(b, *, pad_out):
    b = b.reshape(1, -1).astype(jnp.float32)
    dout = b.shape[-1]
    po = (_round_up(dout, _LANE) - dout) if pad_out else 0
    return jnp.pad(b, ((0, 0), (0, po)))


def _fold_batchnorm(w, b, mean, inv_std):
    """Fold (h - mean) * inv_std of the PREVIOUS stage into this layer's W, b."""
    w_f = w * inv_std[:, None]
    b_f = b - jnp.sum((mean * inv_std)[:, None] * w, axis=0, keepdims=True)
    return w_f, b_f


# ----------------------------- kernels ---------------------------------------


def _linear_relu_stats_kernel(a_ref, w_ref, b_ref, h_ref, stats_ref,
                              *, block_rows, valid_rows, need_mask):
    # h = relu(a @ W + b); MXU matmul with f32 accumulation, bias/ReLU in f32.
    h = jnp.dot(a_ref[...], w_ref[...], preferred_element_type=jnp.float32)
    h = jnp.maximum(h + b_ref[...], 0.0)
    h_ref[...] = h.astype(h_ref.dtype)  # lane-dense store (bf16 on default path)

    # Single-pass BN statistics for this tile from the f32 accumulator.
    # Sublane reductions (VALU/XLU), not MXU matmuls. Padded batch rows are
    # masked out so sums are exact over the true batch.
    hf = h
    if need_mask:
        row = (pl.program_id(0) * block_rows
               + jax.lax.broadcasted_iota(jnp.int32, h.shape, 0))
        hf = jnp.where(row < valid_rows, h, 0.0)
    stats_ref[:, 0:1, :] = jnp.sum(hf, axis=0, keepdims=True)[None, :, :]
    stats_ref[:, 1:2, :] = jnp.sum(hf * hf, axis=0, keepdims=True)[None, :, :]


def _linear_kernel(a_ref, w_ref, b_ref, o_ref):
    o = jnp.dot(a_ref[...], w_ref[...], preferred_element_type=jnp.float32)
    o_ref[...] = (o + b_ref[...]).astype(o_ref.dtype)


# --------------------------- pallas wrappers ----------------------------------


def _compiler_params():
    return pltpu.CompilerParams(
        dimension_semantics=("parallel",),   # batch tiles are independent
        vmem_limit_bytes=_VMEM_LIMIT)


def _linear_relu_stats(a, w, b, *, block_rows, valid_rows):
    padded_batch, f_in = a.shape
    f_out = w.shape[1]
    n_tiles = padded_batch // block_rows

    flops = 2 * padded_batch * f_in * f_out + 6 * padded_batch * f_out
    bytes_accessed = (int(a.size) * a.dtype.itemsize
                      + int(w.size) * w.dtype.itemsize
                      + int(b.size) * b.dtype.itemsize
                      + padded_batch * f_out * a.dtype.itemsize
                      + n_tiles * 2 * f_out * 4)

    kernel = functools.partial(
        _linear_relu_stats_kernel, block_rows=block_rows,
        valid_rows=valid_rows, need_mask=(valid_rows != padded_batch))

    grid_spec = pltpu.PrefetchScalarGridSpec(
        num_scalar_prefetch=0,
        grid=(n_tiles,),
        in_specs=[
            pl.BlockSpec((block_rows, f_in), lambda i: (i, 0)),  # activations: tiled
            pl.BlockSpec((f_in, f_out), lambda i: (0, 0)),       # weights: VMEM-resident
            pl.BlockSpec((1, f_out), lambda i: (0, 0)),          # bias: VMEM-resident
        ],
        out_specs=[
            pl.BlockSpec((block_rows, f_out), lambda i: (i, 0)),
            pl.BlockSpec((1, 2, f_out), lambda i: (i, 0, 0)),    # per-tile partial stats
        ],
    )
    return pl.pallas_call(
        kernel,
        out_shape=(
            jax.ShapeDtypeStruct((padded_batch, f_out), a.dtype),
            jax.ShapeDtypeStruct((n_tiles, 2, f_out), jnp.float32),
        ),
        grid_spec=grid_spec,
        compiler_params=_compiler_params(),
        cost_estimate=pl.CostEstimate(
            flops=flops, transcendentals=0, bytes_accessed=bytes_accessed),
    )(a, w, b)


def _linear_out(a, w, b, *, block_rows):
    padded_batch, f_in = a.shape
    f_out = w.shape[1]                     # real hidden_rep_size (no lane padding)
    n_tiles = padded_batch // block_rows

    flops = 2 * padded_batch * f_in * f_out
    bytes_accessed = (int(a.size) * a.dtype.itemsize
                      + int(w.size) * w.dtype.itemsize
                      + int(b.size) * b.dtype.itemsize
                      + padded_batch * f_out * 4)

    grid_spec = pltpu.PrefetchScalarGridSpec(
        num_scalar_prefetch=0,
        grid=(n_tiles,),
        in_specs=[
            pl.BlockSpec((block_rows, f_in), lambda i: (i, 0)),
            pl.BlockSpec((f_in, f_out), lambda i: (0, 0)),
            pl.BlockSpec((1, f_out), lambda i: (0, 0)),
        ],
        out_specs=pl.BlockSpec((block_rows, f_out), lambda i: (i, 0)),
    )
    return pl.pallas_call(
        _linear_kernel,
        out_shape=jax.ShapeDtypeStruct((padded_batch, f_out), jnp.float32),
        grid_spec=grid_spec,
        compiler_params=_compiler_params(),
        cost_estimate=pl.CostEstimate(
            flops=flops, transcendentals=0, bytes_accessed=bytes_accessed),
    )(a, w, b)


# ------------------------------ forward ---------------------------------------


def encoder_dsl_forward(x, params, *, block_rows=None, compute_dtype=jnp.bfloat16):
    """x: [B, input_size] f32; params: weights [in,out] / biases [1,out]."""
    batch = x.shape[0]
    d_out = params["w4"].shape[1]
    tb = _pick_block_rows(batch, block_rows)
    padded_batch = _round_up(batch, tb)

    a = x
    if padded_batch != batch:
        a = jnp.pad(a, ((0, padded_batch - batch), (0, 0)))  # zero rows (masked in stats)
    a = a.astype(compute_dtype)  # layer 1 reads the real feature width

    mean = inv_std = None
    for layer in (1, 2, 3):
        w = _pad_weight(params[f"w{layer}"], pad_in=(layer != 1), pad_out=True)
        b = _pad_bias(params[f"b{layer}"], pad_out=True)
        if mean is not None:
            w, b = _fold_batchnorm(w, b, mean, inv_std)  # fold previous BN into W, b
        a, part = _linear_relu_stats(a, w.astype(compute_dtype), b,
                                     block_rows=tb, valid_rows=batch)

        # Tiny cross-tile reduce + BN constants for the next stage (f32).
        totals = jnp.sum(part, axis=0)
        m = totals[0] / batch
        var = jnp.maximum(totals[1] / batch - m * m, 0.0)  # biased, single-pass
        mean, inv_std = m, jax.lax.rsqrt(var + _BN_EPS)

    w4, b4 = _fold_batchnorm(
        _pad_weight(params["w4"], pad_in=True, pad_out=False),
        _pad_bias(params["b4"], pad_out=False),
        mean, inv_std)
    out = _linear_out(a, w4.astype(compute_dtype), b4, block_rows=tb)
    return out[:batch]  # drop batch padding; feature width is already real


# --------------------------- init & reference ----------------------------------


def init_encoder_dsl_params(key, input_size, hidden_size, hidden_rep_size):
    """init_weights: W ~ N(0.1, 0.01), b = 0; weights stored [in, out]."""
    h2 = hidden_size // 2
    h4 = hidden_size // 4
    dims = [(input_size, hidden_size), (hidden_size, h2), (h2, h4),
            (h4, hidden_rep_size)]
    params = {}
    keys = jax.random.split(key, len(dims))
    for i, ((din, dout), k) in enumerate(zip(dims, keys), start=1):
        params[f"w{i}"] = (0.1 + 0.01 * jax.random.normal(k, (din, dout))
                           ).astype(jnp.float32)
        params[f"b{i}"] = jnp.zeros((1, dout), dtype=jnp.float32)
    return params


def encoder_dsl_reference(x, params):
    """Plain-JAX reference: Linear -> ReLU -> BatchNorm1d(train) x3 -> Linear."""
    h = x
    for i in (1, 2, 3):
        h = jnp.dot(h, params[f"w{i}"],
                    precision=jax.lax.Precision.HIGHEST) + params[f"b{i}"]
        h = jnp.maximum(h, 0.0)
        mean = jnp.mean(h, axis=0, keepdims=True)
        var = jnp.mean((h - mean) ** 2, axis=0, keepdims=True)
        h = (h - mean) * jax.lax.rsqrt(var + _BN_EPS)
    return jnp.dot(h, params["w4"],
                   precision=jax.lax.Precision.HIGHEST) + params["b4"]


# ------------------------------- demo ------------------------------------------

if __name__ == "__main__":
    # Module-implied small shapes: input_size=32, hidden 32 -> 16 -> 8,
    # hidden_rep_size = input_size / 4 = 8 ("4 times smaller" representation).
    # batch=200 with block_rows=128 exercises batch padding (to 256), masked
    # BN stats and multi-tile cross-tile reduction.
    batch = 200
    input_size = 32
    hidden_size = 32
    hidden_rep_size = 8

    key = jax.random.PRNGKey(0)
    k_x, k_p = jax.random.split(key)
    x = jax.random.normal(k_x, (batch, input_size), dtype=jnp.float32)
    params = init_encoder_dsl_params(k_p, input_size, hidden_size, hidden_rep_size)

    ref = encoder_dsl_reference(x, params)

    # f32 MXU path (tight tolerance).
    fwd_f32 = jax.jit(functools.partial(
        encoder_dsl_forward, block_rows=128, compute_dtype=jnp.float32))
    out_f32 = jax.block_until_ready(fwd_f32(x, params))
    assert out_f32.shape == (batch, hidden_rep_size)
    err = float(jnp.max(jnp.abs(out_f32 - ref)))
    assert err < 1e-3, f"f32 path max abs err {err}"

    # Default bf16 MXU path (native on v6e/v7x); accumulation/bias/ReLU/stats f32.
    fwd_bf16 = jax.jit(functools.partial(encoder_dsl_forward, block_rows=128))
    out_bf16 = jax.block_until_ready(fwd_bf16(x, params))
    assert out_bf16.shape == (batch, hidden_rep_size)
    err_bf16 = float(jnp.max(jnp.abs(out_bf16 - ref)))
    assert err_bf16 < 0.3, f"bf16 path max abs err {err_bf16}"

    print("KERNEL_OK")
</pallas_src>

<mosaic_0001>
module attributes {stable_mosaic.version = 11 : i64} {
  func.func @_linear_relu_stats_kernel(%arg0: i32, %arg1: memref<128x32xf32, #tpu.memory_space<vmem>>, %arg2: memref<32x128xf32, #tpu.memory_space<vmem>>, %arg3: memref<1x128xf32, #tpu.memory_space<vmem>>, %arg4: memref<128x128xf32, #tpu.memory_space<vmem>>, %arg5: memref<1x2x128xf32, #tpu.memory_space<vmem>>) attributes {dimension_semantics = [#tpu.dimension_semantics<parallel>], iteration_bounds = array<i64: 2>, scalar_prefetch = 0 : i64, scratch_operands = 0 : i64, tpu.core_type = #tpu.core_type<tc>, window_params = [{transform_indices = @transform_0, window_bounds = array<i64: 128, 32>}, {pipeline_mode = #tpu.pipeline_mode<synchronous>, transform_indices = @transform_1, window_bounds = array<i64: 32, 128>}, {pipeline_mode = #tpu.pipeline_mode<synchronous>, transform_indices = @transform_2, window_bounds = array<i64: 1, 128>}, {transform_indices = @transform_3, window_bounds = array<i64: 128, 128>}, {transform_indices = @transform_4, window_bounds = array<i64: 1, 2, 128>}]} {
    %c0 = arith.constant 0 : index
    %c0_0 = arith.constant 0 : index
    %0 = vector.load %arg1[%c0, %c0_0] : memref<128x32xf32, #tpu.memory_space<vmem>>, vector<128x32xf32>
    %c0_1 = arith.constant 0 : index
    %c0_2 = arith.constant 0 : index
    %1 = vector.load %arg2[%c0_1, %c0_2] : memref<32x128xf32, #tpu.memory_space<vmem>>, vector<32x128xf32>
    %cst = arith.constant dense<0.000000e+00> : vector<128x128xf32>
    %2 = tpu.matmul %0, %1, %cst {dimension_numbers = #tpu.dot_dimension_numbers<[1], [0], [0], [1], [0, 0, 1, 1], [], []>} : vector<128x32xf32>, vector<32x128xf32>, vector<128x128xf32> -> vector<128x128xf32>
    %c0_3 = arith.constant 0 : index
    %c0_4 = arith.constant 0 : index
    %3 = vector.load %arg3[%c0_3, %c0_4] : memref<1x128xf32, #tpu.memory_space<vmem>>, vector<1x128xf32>
    %4 = vector.broadcast %3 : vector<1x128xf32> to vector<128x128xf32>
    %5 = arith.addf %2, %4 : vector<128x128xf32>
    %cst_5 = arith.constant 0.000000e+00 : f32
    %6 = vector.broadcast %cst_5 : f32 to vector<128x128xf32>
    %7 = arith.maximumf %5, %6 : vector<128x128xf32>
    %c0_6 = arith.constant 0 : index
    %c0_7 = arith.constant 0 : index
    %8 = vector.load %arg4[%c0_6, %c0_7] : memref<128x128xf32, #tpu.memory_space<vmem>>, vector<128x128xf32>
    tpu.vector_store %arg4[%c0_6, %c0_7], %7 {strides = array<i32>} : memref<128x128xf32, #tpu.memory_space<vmem>>, vector<128x128xf32>,
    %c128_i32 = arith.constant 128 : i32
    %9 = arith.muli %arg0, %c128_i32 : i32
    %10 = tpu.iota {dimensions = array<i32: 0>} : vector<128x128xi32>
    %11 = vector.broadcast %9 : i32 to vector<128x128xi32>
    %12 = arith.addi %11, %10 : vector<128x128xi32>
    %c200_i32 = arith.constant 200 : i32
    %13 = vector.broadcast %c200_i32 : i32 to vector<128x128xi32>
    %14 = arith.cmpi slt, %12, %13 : vector<128x128xi32>
    %cst_8 = arith.constant 0.000000e+00 : f32
    %15 = vector.broadcast %cst_8 : f32 to vector<128x128xf32>
    %16 = arith.select %14, %7, %15 : vector<128x128xi1>, vector<128x128xf32>
    %cst_9 = arith.constant dense<0.000000e+00> : vector<128xf32>
    %17 = vector.multi_reduction <add>, %16, %cst_9 [0] : vector<128x128xf32> to vector<128xf32>
    %18 = vector.shape_cast %17 : vector<128xf32> to vector<1x128xf32>
    %19 = vector.shape_cast %18 : vector<1x128xf32> to vector<1x1x128xf32>
    %c0_10 = arith.constant 0 : index
    %c0_11 = arith.constant 0 : index
    %c0_12 = arith.constant 0 : index
    %20 = vector.load %arg5[%c0_10, %c0_11, %c0_12] : memref<1x2x128xf32, #tpu.memory_space<vmem>>, vector<1x1x128xf32>
    tpu.vector_store %arg5[%c0_10, %c0_11, %c0_12], %19 {strides = array<i32>} : memref<1x2x128xf32, #tpu.memory_space<vmem>>, vector<1x1x128xf32>,
    %21 = arith.mulf %16, %16 : vector<128x128xf32>
    %cst_13 = arith.constant dense<0.000000e+00> : vector<128xf32>
    %22 = vector.multi_reduction <add>, %21, %cst_13 [0] : vector<128x128xf32> to vector<128xf32>
    %23 = vector.shape_cast %22 : vector<128xf32> to vector<1x128xf32>
    %24 = vector.shape_cast %23 : vector<1x128xf32> to vector<1x1x128xf32>
    %c0_14 = arith.constant 0 : index
    %c1 = arith.constant 1 : index
    %c0_15 = arith.constant 0 : index
    %25 = vector.load %arg5[%c0_14, %c1, %c0_15] : memref<1x2x128xf32, #tpu.memory_space<vmem>>, vector<1x1x128xf32>
    tpu.vector_store %arg5[%c0_14, %c1, %c0_15], %24 {strides = array<i32>} : memref<1x2x128xf32, #tpu.memory_space<vmem>>, vector<1x1x128xf32>,
    return
  }
  func.func @transform_0(%arg0: i32) -> (i32, i32) {
    %c0_i32 = arith.constant 0 : i32
    %c0_i32_0 = arith.constant 0 : i32
    return %arg0, %c0_i32 : i32, i32
  }
  func.func @transform_1(%arg0: i32) -> (i32, i32) {
    %c0_i32 = arith.constant 0 : i32
    %c0_i32_0 = arith.constant 0 : i32
    %c0_i32_1 = arith.constant 0 : i32
    return %c0_i32, %c0_i32_0 : i32, i32
  }
  func.func @transform_2(%arg0: i32) -> (i32, i32) {
    %c0_i32 = arith.constant 0 : i32
    %c0_i32_0 = arith.constant 0 : i32
    %c0_i32_1 = arith.constant 0 : i32
    return %c0_i32, %c0_i32_0 : i32, i32
  }
  func.func @transform_3(%arg0: i32) -> (i32, i32) {
    %c0_i32 = arith.constant 0 : i32
    %c0_i32_0 = arith.constant 0 : i32
    return %arg0, %c0_i32 : i32, i32
  }
  func.func @transform_4(%arg0: i32) -> (i32, i32, i32) {
    %c0_i32 = arith.constant 0 : i32
    %c0_i32_0 = arith.constant 0 : i32
    %c0_i32_1 = arith.constant 0 : i32
    return %arg0, %c0_i32, %c0_i32_0 : i32, i32, i32
  }
}

module attributes {stable_mosaic.version = 11 : i64} {
  func.func @_linear_relu_stats_kernel(%arg0: i32, %arg1: memref<128x128xf32, #tpu.memory_space<vmem>>, %arg2: memref<128x128xf32, #tpu.memory_space<vmem>>, %arg3: memref<1x128xf32, #tpu.memory_space<vmem>>, %arg4: memref<128x128xf32, #tpu.memory_space<vmem>>, %arg5: memref<1x2x128xf32, #tpu.memory_space<vmem>>) attributes {dimension_semantics = [#tpu.dimension_semantics<parallel>], iteration_bounds = array<i64: 2>, scalar_prefetch = 0 : i64, scratch_operands = 0 : i64, tpu.core_type = #tpu.core_type<tc>, window_params = [{transform_indices = @transform_0, window_bounds = array<i64: 128, 128>}, {pipeline_mode = #tpu.pipeline_mode<synchronous>, transform_indices = @transform_1, window_bounds = array<i64: 128, 128>}, {pipeline_mode = #tpu.pipeline_mode<synchronous>, transform_indices = @transform_2, window_bounds = array<i64: 1, 128>}, {transform_indices = @transform_3, window_bounds = array<i64: 128, 128>}, {transform_indices = @transform_4, window_bounds = array<i64: 1, 2, 128>}]} {
    %c0 = arith.constant 0 : index
    %c0_0 = arith.constant 0 : index
    %0 = vector.load %arg1[%c0, %c0_0] : memref<128x128xf32, #tpu.memory_space<vmem>>, vector<128x128xf32>
    %c0_1 = arith.constant 0 : index
    %c0_2 = arith.constant 0 : index
    %1 = vector.load %arg2[%c0_1, %c0_2] : memref<128x128xf32, #tpu.memory_space<vmem>>, vector<128x128xf32>
    %cst = arith.constant dense<0.000000e+00> : vector<128x128xf32>
    %2 = tpu.matmul %0, %1, %cst {dimension_numbers = #tpu.dot_dimension_numbers<[1], [0], [0], [1], [0, 0, 1, 1], [], []>} : vector<128x128xf32>, vector<128x128xf32>, vector<128x128xf32> -> vector<128x128xf32>
    %c0_3 = arith.constant 0 : index
    %c0_4 = arith.constant 0 : index
    %3 = vector.load %arg3[%c0_3, %c0_4] : memref<1x128xf32, #tpu.memory_space<vmem>>, vector<1x128xf32>
    %4 = vector.broadcast %3 : vector<1x128xf32> to vector<128x128xf32>
    %5 = arith.addf %2, %4 : vector<128x128xf32>
    %cst_5 = arith.constant 0.000000e+00 : f32
    %6 = vector.broadcast %cst_5 : f32 to vector<128x128xf32>
    %7 = arith.maximumf %5, %6 : vector<128x128xf32>
    %c0_6 = arith.constant 0 : index
    %c0_7 = arith.constant 0 : index
    %8 = vector.load %arg4[%c0_6, %c0_7] : memref<128x128xf32, #tpu.memory_space<vmem>>, vector<128x128xf32>
    tpu.vector_store %arg4[%c0_6, %c0_7], %7 {strides = array<i32>} : memref<128x128xf32, #tpu.memory_space<vmem>>, vector<128x128xf32>,
    %c128_i32 = arith.constant 128 : i32
    %9 = arith.muli %arg0, %c128_i32 : i32
    %10 = tpu.iota {dimensions = array<i32: 0>} : vector<128x128xi32>
    %11 = vector.broadcast %9 : i32 to vector<128x128xi32>
    %12 = arith.addi %11, %10 : vector<128x128xi32>
    %c200_i32 = arith.constant 200 : i32
    %13 = vector.broadcast %c200_i32 : i32 to vector<128x128xi32>
    %14 = arith.cmpi slt, %12, %13 : vector<128x128xi32>
    %cst_8 = arith.constant 0.000000e+00 : f32
    %15 = vector.broadcast %cst_8 : f32 to vector<128x128xf32>
    %16 = arith.select %14, %7, %15 : vector<128x128xi1>, vector<128x128xf32>
    %cst_9 = arith.constant dense<0.000000e+00> : vector<128xf32>
    %17 = vector.multi_reduction <add>, %16, %cst_9 [0] : vector<128x128xf32> to vector<128xf32>
    %18 = vector.shape_cast %17 : vector<128xf32> to vector<1x128xf32>
    %19 = vector.shape_cast %18 : vector<1x128xf32> to vector<1x1x128xf32>
    %c0_10 = arith.constant 0 : index
    %c0_11 = arith.constant 0 : index
    %c0_12 = arith.constant 0 : index
    %20 = vector.load %arg5[%c0_10, %c0_11, %c0_12] : memref<1x2x128xf32, #tpu.memory_space<vmem>>, vector<1x1x128xf32>
    tpu.vector_store %arg5[%c0_10, %c0_11, %c0_12], %19 {strides = array<i32>} : memref<1x2x128xf32, #tpu.memory_space<vmem>>, vector<1x1x128xf32>,
    %21 = arith.mulf %16, %16 : vector<128x128xf32>
    %cst_13 = arith.constant dense<0.000000e+00> : vector<128xf32>
    %22 = vector.multi_reduction <add>, %21, %cst_13 [0] : vector<128x128xf32> to vector<128xf32>
    %23 = vector.shape_cast %22 : vector<128xf32> to vector<1x128xf32>
    %24 = vector.shape_cast %23 : vector<1x128xf32> to vector<1x1x128xf32>
    %c0_14 = arith.constant 0 : index
    %c1 = arith.constant 1 : index
    %c0_15 = arith.constant 0 : index
    %25 = vector.load %arg5[%c0_14, %c1, %c0_15] : memref<1x2x128xf32, #tpu.memory_space<vmem>>, vector<1x1x128xf32>
    tpu.vector_store %arg5[%c0_14, %c1, %c0_15], %24 {strides = array<i32>} : memref<1x2x128xf32, #tpu.memory_space<vmem>>, vector<1x1x128xf32>,
    return
  }
  func.func @transform_0(%arg0: i32) -> (i32, i32) {
    %c0_i32 = arith.constant 0 : i32
    %c0_i32_0 = arith.constant 0 : i32
    return %arg0, %c0_i32 : i32, i32
  }
  func.func @transform_1(%arg0: i32) -> (i32, i32) {
    %c0_i32 = arith.constant 0 : i32
    %c0_i32_0 = arith.constant 0 : i32
    %c0_i32_1 = arith.constant 0 : i32
    return %c0_i32, %c0_i32_0 : i32, i32
  }
  func.func @transform_2(%arg0: i32) -> (i32, i32) {
    %c0_i32 = arith.constant 0 : i32
    %c0_i32_0 = arith.constant 0 : i32
    %c0_i32_1 = arith.constant 0 : i32
    return %c0_i32, %c0_i32_0 : i32, i32
  }
  func.func @transform_3(%arg0: i32) -> (i32, i32) {
    %c0_i32 = arith.constant 0 : i32
    %c0_i32_0 = arith.constant 0 : i32
    return %arg0, %c0_i32 : i32, i32
  }
  func.func @transform_4(%arg0: i32) -> (i32, i32, i32) {
    %c0_i32 = arith.constant 0 : i32
    %c0_i32_0 = arith.constant 0 : i32
    %c0_i32_1 = arith.constant 0 : i32
    return %arg0, %c0_i32, %c0_i32_0 : i32, i32, i32
  }
}

module attributes {stable_mosaic.version = 11 : i64} {
  func.func @_linear_kernel(%arg0: i32, %arg1: memref<128x128xf32, #tpu.memory_space<vmem>>, %arg2: memref<128x8xf32, #tpu.memory_space<vmem>>, %arg3: memref<1x8xf32, #tpu.memory_space<vmem>>, %arg4: memref<128x8xf32, #tpu.memory_space<vmem>>) attributes {dimension_semantics = [#tpu.dimension_semantics<parallel>], iteration_bounds = array<i64: 2>, scalar_prefetch = 0 : i64, scratch_operands = 0 : i64, tpu.core_type = #tpu.core_type<tc>, window_params = [{transform_indices = @transform_0, window_bounds = array<i64: 128, 128>}, {pipeline_mode = #tpu.pipeline_mode<synchronous>, transform_indices = @transform_1, window_bounds = array<i64: 128, 8>}, {pipeline_mode = #tpu.pipeline_mode<synchronous>, transform_indices = @transform_2, window_bounds = array<i64: 1, 8>}, {transform_indices = @transform_3, window_bounds = array<i64: 128, 8>}]} {
    %c0 = arith.constant 0 : index
    %c0_0 = arith.constant 0 : index
    %0 = vector.load %arg1[%c0, %c0_0] : memref<128x128xf32, #tpu.memory_space<vmem>>, vector<128x128xf32>
    %c0_1 = arith.constant 0 : index
    %c0_2 = arith.constant 0 : index
    %1 = vector.load %arg2[%c0_1, %c0_2] : memref<128x8xf32, #tpu.memory_space<vmem>>, vector<128x8xf32>
    %cst = arith.constant dense<0.000000e+00> : vector<128x8xf32>
    %2 = tpu.matmul %0, %1, %cst {dimension_numbers = #tpu.dot_dimension_numbers<[1], [0], [0], [1], [0, 0, 1, 1], [], []>} : vector<128x128xf32>, vector<128x8xf32>, vector<128x8xf32> -> vector<128x8xf32>
    %c0_3 = arith.constant 0 : index
    %c0_4 = arith.constant 0 : index
    %3 = vector.load %arg3[%c0_3, %c0_4] : memref<1x8xf32, #tpu.memory_space<vmem>>, vector<1x8xf32>
    %4 = vector.broadcast %3 : vector<1x8xf32> to vector<128x8xf32>
    %5 = arith.addf %2, %4 : vector<128x8xf32>
    %c0_5 = arith.constant 0 : index
    %c0_6 = arith.constant 0 : index
    %6 = vector.load %arg4[%c0_5, %c0_6] : memref<128x8xf32, #tpu.memory_space<vmem>>, vector<128x8xf32>
    tpu.vector_store %arg4[%c0_5, %c0_6], %5 {strides = array<i32>} : memref<128x8xf32, #tpu.memory_space<vmem>>, vector<128x8xf32>,
    return
  }
  func.func @transform_0(%arg0: i32) -> (i32, i32) {
    %c0_i32 = arith.constant 0 : i32
    %c0_i32_0 = arith.constant 0 : i32
    return %arg0, %c0_i32 : i32, i32
  }
  func.func @transform_1(%arg0: i32) -> (i32, i32) {
    %c0_i32 = arith.constant 0 : i32
    %c0_i32_0 = arith.constant 0 : i32
    %c0_i32_1 = arith.constant 0 : i32
    return %c0_i32, %c0_i32_0 : i32, i32
  }
  func.func @transform_2(%arg0: i32) -> (i32, i32) {
    %c0_i32 = arith.constant 0 : i32
    %c0_i32_0 = arith.constant 0 : i32
    %c0_i32_1 = arith.constant 0 : i32
    return %c0_i32, %c0_i32_0 : i32, i32
  }
  func.func @transform_3(%arg0: i32) -> (i32, i32) {
    %c0_i32 = arith.constant 0 : i32
    %c0_i32_0 = arith.constant 0 : i32
    return %arg0, %c0_i32 : i32, i32
  }
}

</mosaic_0001>

<bundles_post_ra>
// kernel: encoder_dsl_forward.4
= control target key start
LH: loop header
LB: loop body
LE: loop exit
PB: predicated region body
PF: predicated region fallthrough
CT: control target
= control target key end

     0   :  { %s814_s15 = smov 0   ;;  %s1051_s0 = inlined_call_operand.vmem [shape: f32[256,32], index: 0, kind: input, shape index: {}]   ;;  %s1052_s1 = inlined_call_operand.vmem [shape: f32[32,128], index: 1, kind: input, shape index: {}]   ;;  %s1053_s2 = inlined_call_operand.vmem [shape: f32[1,128], index: 2, kind: input, shape index: {}]   ;;  %s1054_s3 = inlined_call_operand.vmem [shape: f32[256,128], index: 3, kind: output, shape index: {0}]   ;;  %s1055_s4 = inlined_call_operand.vmem [shape: f32[2,2,128], index: 4, kind: output, shape index: {1}]  }
   0x1 LB: > { %s820_s16 = sadd.s32 4294967295, %s787_s15   ;;  %p683_p0 = scmp.ge.s32.totalorder %s787_s15, 1  ;;  %s787_s15 = sphi %s814_s15, %s15_s15  }
   0x2   : > { %p166_p1 = scmp.lt.s32.totalorder %s787_s15, 3 }
   0x4   : > { %p167_p2 = pnand %p683_p0, %p166_p1 }
   0x5   : > { %v228_v0 = vld [vmem:[%s1052_s1] sm:$0xff] (!%p167_p2)  ;;  %v229_v1 = vld [vmem:[%s1052_s1 + $0x8] sm:$0xff] (!%p167_p2)  ;;  %v230_v2 = vld [vmem:[%s1052_s1 + $0x10] sm:$0xff] (!%p167_p2)  ;;  %s684_s23 = sshll.u32 (!%p167_p2), %s820_s16, 4  ;;  %vm239_vm0 = vcmask (!%p167_p2), 261120   ;;  %v466_v22 = vlaneseq (!%p167_p2)  ;;  %s706_s30 = sshll.u32 (!%p167_p2), %s820_s16, 7 }
   0x6   : > { %170 = sbr.rel (%p167_p2) target bundleno = 283 (0x11b), region = 32  ;;  %v761_v3 = vpack.c.bf16 (!%p167_p2), %v229_v1, %v228_v0  ;;  %v231_v4 = vld [vmem:[%s1052_s1 + $0x18] sm:$0xff] (!%p167_p2)  ;;  %p197_p3 = scmp.lt.s32.totalorder (!%p167_p2), %s684_s23, 31  ;;  %v883_v25 = vstv (!%p167_p2), %s706_s30  ;;  %v900_v33 = vld [vmem:[%s1053_s2] ss:$0 sm:$0xff] (!%p167_p2) }
   0x7   : > { %v765_v5 = vpack.c.bf16 (!%p167_p2), %v231_v4, %v230_v2  ;;  %v879_v23 = vshrl.u32 (!%p167_p2), %v466_v22, 7  ;;  %p208_p4 = scmp.lt.s32.totalorder (!%p167_p2), %s820_s16, 1 }
   0x8   : > { %762 = vmatprep.subr.bf16.mxu0 (!%p167_p2), %v761_v3  ;;  %769 = vmatprep.subr.bf16.mxu1 (!%p167_p2), %v761_v3 }
   0x9   : > { %764 = vmatpush3.bf16.msra.mxu0 (!%p167_p2), %v761_v3  ;;  %771 = vmatpush3.bf16.msra.mxu1 (!%p167_p2), %v761_v3  ;;  %v468_v24 = vadd.s32 (!%p167_p2), 8, %v879_v23  ;;  %v470_v26 = vadd.s32 (!%p167_p2), 24, %v879_v23  ;;  %v469_v27 = vadd.s32 (!%p167_p2), 16, %v879_v23  ;;  %v472_v28 = vadd.s32 (!%p167_p2), 40, %v879_v23 }
   0xa   : > { %766 = vmatprep.subr.bf16.mxu0 (!%p167_p2), %v765_v5  ;;  %770 = vmatprep.subr.bf16.mxu1 (!%p167_p2), %v765_v5  ;;  %v484_v30 = vadd.s32 (!%p167_p2), %v883_v25, %v879_v23  ;;  %v471_v34 = vadd.s32 (!%p167_p2), 32, %v879_v23  ;;  %v474_v35 = vadd.s32 (!%p167_p2), 56, %v879_v23  ;;  %v473_v37 = vadd.s32 (!%p167_p2), 48, %v879_v23 }
   0xb   : > { %v485_v29 = vadd.s32 (!%p167_p2), %v883_v25, %v468_v24  ;;  %v892_v31 = vadd.s32 (!%p167_p2), %v883_v25, %v470_v26  ;;  %v895_v32 = vadd.s32 (!%p167_p2), %v883_v25, %v469_v27  ;;  %v905_v36 = vadd.s32 (!%p167_p2), %v883_v25, %v472_v28 }
   0xc   : > { %v475_v39 = vadd.s32 (!%p167_p2), 64, %v879_v23  ;;  %vm500_vm2 = vcmp.lt.s32.totalorder (!%p167_p2), %v484_v30, 200  ;;  %v921_v44 = vadd.s32 (!%p167_p2), %v883_v25, %v471_v34  ;;  %v924_v45 = vadd.s32 (!%p167_p2), %v883_v25, %v474_v35 }
   0xd   : > { %s1057_s23 = smov (!%p197_p3, %s684_s23), 31  ;;  %768 = vmatpush3.bf16.msra.mxu0 %v765_v5  ;;  %772 = vmatpush3.bf16.msra.mxu1 %v765_v5  ;;  %vm501_vm1 = vcmp.lt.s32.totalorder %v485_v29, 200  ;;  %vm503_vm3 = vcmp.lt.s32.totalorder %v892_v31, 200  ;;  %vm502_vm4 = vcmp.lt.s32.totalorder %v895_v32, 200  ;;  %vm505_vm5 = vcmp.lt.s32.totalorder %v905_v36, 200  ;;  %s1059_s16 = smov (!%p208_p4, %s820_s16), 1 }
   0xe   : > { %s685_s26 = sshll.u32 %s1057_s23, 3  ;;  %v931_v49 = vadd.s32 %v883_v25, %v473_v37  ;;  %v476_v50 = vadd.s32 72, %v879_v23  ;;  %v939_v55 = vadd.s32 %v883_v25, %v475_v39  ;;  %v478_v56 = vadd.s32 88, %v879_v23  ;;  %s688_s10 = sshll.u32 %s1059_s16, 1 }
   0xf   : > { %s845_s29 = scalar_lea.vmem %s1051_s0, %s685_s26  ;;  %s917_s9 = scalar_lea.vmem %s1054_s3, %s685_s26  ;;  %v477_v62 = vadd.s32 80, %v879_v23  ;;  %vm504_vm6 = vcmp.lt.s32.totalorder %v921_v44, 200  ;;  %vm507_vm7 = vcmp.lt.s32.totalorder %v924_v45, 200  ;;  %v479_v32 = vadd.s32 96, %v879_v23 }
  0x10   : > { %v212_v6 = vld [vmem:[%s845_s29] sm:$0xff]  ;;  %v213_v7 = vld [vmem:[%s845_s29 + $0x8] sm:$0xff]  ;;  %v214_v8 = vld [vmem:[%s845_s29 + $0x10] sm:$0xff]  ;;  %vm506_vm8 = vcmp.lt.s32.totalorder %v931_v49, 200  ;;  %vm508_vm9 = vcmp.lt.s32.totalorder %v939_v55, 200  ;;  %s211_s13 = scalar_lea.vmem %s1055_s4, %s688_s10 }
  0x11   : > { %737 = vmatprep.mubr.msk.f32.mxu0 %vm239_vm0, %v212_v6  ;;  %v220_v9 = vld [vmem:[%s845_s29 + $0x40] sm:$0xff]  ;;  %v221_v10 = vld [vmem:[%s845_s29 + $0x48] sm:$0xff]  ;;  %v222_v11 = vld [vmem:[%s845_s29 + $0x50] sm:$0xff]  ;;  %v957_v6 = vadd.s32 %v883_v25, %v476_v50  ;;  %v496_v44 = vadd.s32 %v883_v25, %v479_v32 }
  0x12   : > { %749 = vmatprep.mubr.msk.f32.mxu1 %vm239_vm0, %v220_v9  ;;  %738 = vmatmul.mubr.msk.f32.vlgmr.msra.gmra.mrb[0].mxu0 %vm239_vm0, %v213_v7  ;;  %v215_v12 = vld [vmem:[%s845_s29 + $0x18] sm:$0xff]  ;;  %v216_v13 = vld [vmem:[%s845_s29 + $0x20] sm:$0xff]  ;;  %v217_v16 = vld [vmem:[%s845_s29 + $0x28] sm:$0xff] }
  0x13   : > { %740 = vmatprep.mubr.msk.f32.mxu0 %vm239_vm0, %v214_v8  ;;  %750 = vmatmul.mubr.msk.f32.vlgmr.msra.gmra.mrb[0].mxu1 %vm239_vm0, %v221_v10  ;;  %v223_v14 = vld [vmem:[%s845_s29 + $0x58] sm:$0xff]  ;;  %v224_v15 = vld [vmem:[%s845_s29 + $0x60] sm:$0xff]  ;;  %v218_v17 = vld [vmem:[%s845_s29 + $0x30] sm:$0xff]  ;;  %vm509_vm10 = vcmp.lt.s32.totalorder %v957_v6, 200  ;;  %vm512_vm13 = vcmp.lt.s32.totalorder %v496_v44, 200 }
  0x14   : > { %752 = vmatprep.mubr.msk.f32.mxu1 %vm239_vm0, %v222_v11  ;;  %v225_v18 = vld [vmem:[%s845_s29 + $0x68] sm:$0xff]  ;;  %v226_v19 = vld [vmem:[%s845_s29 + $0x70] sm:$0xff]  ;;  %v219_v20 = vld [vmem:[%s845_s29 + $0x38] sm:$0xff] }
  0x15   : > { %v227_v21 = vld [vmem:[%s845_s29 + $0x78] sm:$0xff] }
  0x16   : > { %741 = vmatmul.mubr.msk.f32.gmra.mrb[2].mxu0 %vm239_vm0, %v215_v12 }
  0x17   : > { %743 = vmatprep.mubr.msk.f32.mxu0 %vm239_vm0, %v216_v13  ;;  %753 = vmatmul.mubr.msk.f32.gmra.mrb[2].mxu1 %vm239_vm0, %v223_v14  ;;  %v972_v14 = vadd.s32 %v883_v25, %v478_v56 }
  0x18   : > { %755 = vmatprep.mubr.msk.f32.mxu1 %vm239_vm0, %v224_v15  ;;  %v975_v15 = vadd.s32 %v883_v25, %v477_v62 }
  0x19   : > { %vm511_vm11 = vcmp.lt.s32.totalorder %v972_v14, 200 }
  0x1a   : > { %744 = vmatmul.mubr.msk.f32.gmra.mrb[4].mxu0 %vm239_vm0, %v217_v16  ;;  %vm510_vm12 = vcmp.lt.s32.totalorder %v975_v15, 200 }
  0x1b   : > { %746 = vmatprep.mubr.msk.f32.mxu0 %vm239_vm0, %v218_v17  ;;  %756 = vmatmul.mubr.msk.f32.gmra.mrb[4].mxu1 %vm239_vm0, %v225_v18 }
  0x1c   : > { %758 = vmatprep.mubr.msk.f32.mxu1 %vm239_vm0, %v226_v19 }
  0x1e   : > { %747 = vmatmul.mubr.msk.f32.gmra.mrb[6].mxu0 %vm239_vm0, %v219_v20 }
  0x1f   : > { %759 = vmatmul.mubr.msk.f32.gmra.mrb[6].mxu1 %vm239_vm0, %v227_v21 }
  0xe5   : > { %v739_v38 = vpop.f32.mrb[0].mxu0 }
  0xe6   : > { %v360_v40 = vadd.f32 %v739_v38, %v900_v33  ;;  %v354_v41 = vpop.f32.mrb[1].mxu0  ;;  %v751_v42 = vpop.f32.mrb[0].mxu1 }
  0xe7   : > { %v355_v43 = vadd.f32 %v900_v33, %v354_v41  ;;  %v927_v46 = vadd.f32 %v751_v42, %v900_v33  ;;  %v394_v47 = vpop.f32.mrb[1].mxu1 }
  0xe8   : > { %v434_v48 = vmax.f32 %v360_v40, 0.0  ;;  %v935_v51 = vadd.f32 %v900_v33, %v394_v47  ;;  %v480_v47 = vadd.s32 104, %v879_v23 }
  0xe9   : > { %v433_v52 = vmax.f32 %v355_v43, 0.0  ;;  %v742_v53 = vpop.f32.mrb[2].mxu0  ;;  %v442_v54 = vmax.f32 %v927_v46, 0.0 }
  0xea   : > { %450 = vst [vmem:[%s917_s9 + $0x8] sm:$0xff] %v434_v48  ;;  %v517_v57 = vsel %vm501_vm1, %v434_v48, 0.0  ;;  %v370_v58 = vadd.f32 %v742_v53, %v900_v33  ;;  %v364_v59 = vpop.f32.mrb[3].mxu0  ;;  %v441_v60 = vmax.f32 %v935_v51, 0.0  ;;  %v754_v61 = vpop.f32.mrb[2].mxu1  ;;  %v497_v45 = vadd.s32 %v883_v25, %v480_v47 }
  0xeb   : > { %v555_v63 = vmul.f32 %v517_v57, %v517_v57  ;;  %449 = vst [vmem:[%s917_s9] sm:$0xff] %v433_v52  ;;  %v516_v0 = vsel %vm500_vm2, %v433_v52, 0.0  ;;  %v365_v1 = vadd.f32 %v900_v33, %v364_v59  ;;  %458 = vst [vmem:[%s917_s9 + $0x48] sm:$0xff] %v442_v54  ;;  %v404_v2 = vpop.f32.mrb[3].mxu1  ;;  %v964_v9 = vadd.f32 %v754_v61, %v900_v33 }
  0xec   : > { %v532_v3 = vadd.f32 %v517_v57, %v516_v0  ;;  %v554_v4 = vmul.f32 %v516_v0, %v516_v0  ;;  %v436_v5 = vmax.f32 %v370_v58, 0.0  ;;  %457 = vst [vmem:[%s917_s9 + $0x40] sm:$0xff] %v441_v60  ;;  %v967_v10 = vadd.f32 %v900_v33, %v404_v2 }
  0xed   : > { %v435_v7 = vmax.f32 %v365_v1, 0.0  ;;  %v745_v8 = vpop.f32.mrb[4].mxu0  ;;  %v444_v20 = vmax.f32 %v964_v9, 0.0  ;;  %v524_v1 = vsel %vm508_vm9, %v441_v60, 0.0  ;;  %vm513_vm14 = vcmp.lt.s32.totalorder %v497_v45, 200 }
  0xee   : > { %v570_v11 = vadd.f32 %v555_v63, %v554_v4  ;;  %452 = vst [vmem:[%s917_s9 + $0x18] sm:$0xff] %v436_v5  ;;  %v380_v12 = vadd.f32 %v745_v8, %v900_v33  ;;  %v374_v13 = vpop.f32.mrb[5].mxu0  ;;  %v757_v16 = vpop.f32.mrb[4].mxu1  ;;  %v519_v17 = vsel %vm503_vm3, %v436_v5, 0.0  ;;  %v443_v27 = vmax.f32 %v967_v10, 0.0 }
  0xef   : > { %451 = vst [vmem:[%s917_s9 + $0x10] sm:$0xff] %v435_v7  ;;  %v518_v18 = vsel %vm502_vm4, %v435_v7, 0.0  ;;  %v375_v19 = vadd.f32 %v900_v33, %v374_v13  ;;  %v414_v21 = vpop.f32.mrb[5].mxu1  ;;  %460 = vst [vmem:[%s917_s9 + $0x58] sm:$0xff] %v444_v20  ;;  %v990_v30 = vadd.f32 %v757_v16, %v900_v33  ;;  %v557_v34 = vmul.f32 %v519_v17, %v519_v17 }
  0xf0   : > { %v533_v22 = vadd.f32 %v532_v3, %v518_v18  ;;  %v556_v24 = vmul.f32 %v518_v18, %v518_v18  ;;  %v438_v26 = vmax.f32 %v380_v12, 0.0  ;;  %v993_v31 = vadd.f32 %v900_v33, %v414_v21  ;;  %459 = vst [vmem:[%s917_s9 + $0x50] sm:$0xff] %v443_v27 }
  0xf1   : > { %v437_v28 = vmax.f32 %v375_v19, 0.0  ;;  %v748_v29 = vpop.f32.mrb[6].mxu0  ;;  %v446_v36 = vmax.f32 %v990_v30, 0.0  ;;  %v481_v5 = vadd.s32 112, %v879_v23  ;;  %v562_v8 = vmul.f32 %v524_v1, %v524_v1 }
  0xf2   : > { %v571_v35 = vadd.f32 %v570_v11, %v556_v24  ;;  %454 = vst [vmem:[%s917_s9 + $0x28] sm:$0xff] %v438_v26  ;;  %v534_v37 = vadd.f32 %v533_v22, %v519_v17  ;;  %v390_v38 = vadd.f32 %v748_v29, %v900_v33  ;;  %v384_v39 = vpop.f32.mrb[7].mxu0  ;;  %v760_v40 = vpop.f32.mrb[6].mxu1  ;;  %v521_v41 = vsel %vm505_vm5, %v438_v26, 0.0 }
  0xf3   : > { %453 = vst [vmem:[%s917_s9 + $0x20] sm:$0xff] %v437_v28  ;;  %v520_v42 = vsel %vm504_vm6, %v437_v28, 0.0  ;;  %v385_v43 = vadd.f32 %v900_v33, %v384_v39  ;;  %v424_v48 = vpop.f32.mrb[7].mxu1  ;;  %v445_v58 = vmax.f32 %v993_v31, 0.0  ;;  %v559_v59 = vmul.f32 %v521_v41, %v521_v41  ;;  %462 = vst [vmem:[%s917_s9 + $0x68] sm:$0xff] %v446_v36 }
  0xf4   : > { %v535_v50 = vadd.f32 %v534_v37, %v520_v42  ;;  %v558_v52 = vmul.f32 %v520_v42, %v520_v42  ;;  %v572_v53 = vadd.f32 %v571_v35, %v557_v34  ;;  %v440_v56 = vmax.f32 %v390_v38, 0.0 }
  0xf5   : > { %v439_v57 = vmax.f32 %v385_v43, 0.0  ;;  %461 = vst [vmem:[%s917_s9 + $0x60] sm:$0xff] %v445_v58  ;;  %v430_v49 = vadd.f32 %v760_v40, %v900_v33  ;;  %v425_v51 = vadd.f32 %v900_v33, %v424_v48  ;;  %v525_v10 = vsel %vm509_vm10, %v442_v54, 0.0 }
  0xf6   : > { %v573_v61 = vadd.f32 %v572_v53, %v558_v52  ;;  %456 = vst [vmem:[%s917_s9 + $0x38] sm:$0xff] %v440_v56  ;;  %v536_v62 = vadd.f32 %v535_v50, %v521_v41  ;;  %v523_v63 = vsel %vm507_vm7, %v440_v56, 0.0  ;;  %v526_v11 = vsel %vm510_vm12, %v443_v27, 0.0 }
  0xf7   : > { %455 = vst [vmem:[%s917_s9 + $0x30] sm:$0xff] %v439_v57  ;;  %v522_v0 = vsel %vm506_vm8, %v439_v57, 0.0  ;;  %v561_v55 = vmul.f32 %v523_v63, %v523_v63  ;;  %v448_v12 = vmax.f32 %v430_v49, 0.0  ;;  %v447_v13 = vmax.f32 %v425_v51, 0.0 }
  0xf8   : > { %v537_v2 = vadd.f32 %v536_v62, %v522_v0  ;;  %v560_v3 = vmul.f32 %v522_v0, %v522_v0  ;;  %v574_v4 = vadd.f32 %v573_v61, %v559_v59  ;;  %v482_v18 = vadd.s32 120, %v879_v23 }
  0xf9   : > { %v498_v33 = vadd.s32 %v883_v25, %v481_v5  ;;  %464 = vst [vmem:[%s917_s9 + $0x78] sm:$0xff] %v448_v12  ;;  %463 = vst [vmem:[%s917_s9 + $0x70] sm:$0xff] %v447_v13  ;;  %v563_v19 = vmul.f32 %v525_v10, %v525_v10  ;;  %v564_v46 = vmul.f32 %v526_v11, %v526_v11  ;;  %v527_v54 = vsel %vm511_vm11, %v444_v20, 0.0 }
  0xfa   : > { %v575_v60 = vadd.f32 %v574_v4, %v560_v3  ;;  %v538_v7 = vadd.f32 %v537_v2, %v523_v63  ;;  %v528_v6 = vsel %vm512_vm13, %v445_v58, 0.0  ;;  %v499_v23 = vadd.s32 %v883_v25, %v482_v18 }
  0xfb   : > { %vm514_vm15 = vcmp.lt.s32.totalorder %v498_v33, 200  ;;  %v565_v26 = vmul.f32 %v527_v54, %v527_v54  ;;  %v566_v29 = vmul.f32 %v528_v6, %v528_v6  ;;  %v529_v30 = vsel %vm513_vm14, %v446_v36, 0.0 }
  0xfc   : > { %v539_v16 = vadd.f32 %v538_v7, %v524_v1  ;;  %v576_v17 = vadd.f32 %v575_v60, %v561_v55  ;;  %v530_v31 = vsel %vm514_vm15, %v447_v13, 0.0  ;;  %vm515_vm0 = vcmp.lt.s32.totalorder %v499_v23, 200 }
  0xfd   : > { %v567_v14 = vmul.f32 %v529_v30, %v529_v30  ;;  %v568_v35 = vmul.f32 %v530_v31, %v530_v31  ;;  %v531_v37 = vsel %vm515_vm0, %v448_v12, 0.0 }
  0xfe   : > { %v577_v21 = vadd.f32 %v576_v17, %v562_v8  ;;  %v540_v22 = vadd.f32 %v539_v16, %v525_v10  ;;  %v569_v25 = vmul.f32 %v531_v37, %v531_v37 }
 0x100   : > { %v541_v15 = vadd.f32 %v540_v22, %v526_v11  ;;  %v578_v24 = vadd.f32 %v577_v21, %v563_v19 }
 0x102   : > { %v579_v27 = vadd.f32 %v578_v24, %v564_v46  ;;  %v542_v28 = vadd.f32 %v541_v15, %v527_v54 }
 0x104   : > { %v543_v32 = vadd.f32 %v542_v28, %v528_v6  ;;  %v580_v9 = vadd.f32 %v579_v27, %v565_v26 }
 0x106   : > { %v581_v20 = vadd.f32 %v580_v9, %v566_v29  ;;  %v544_v34 = vadd.f32 %v543_v32, %v529_v30 }
 0x108   : > { %v545_v38 = vadd.f32 %v544_v34, %v530_v31  ;;  %v582_v39 = vadd.f32 %v581_v20, %v567_v14 }
 0x10a   : > { %v546_v40 = vadd.f32 %v545_v38, %v531_v37  ;;  %v583_v41 = vadd.f32 %v582_v39, %v568_v35 }
 0x10c   : > { %v547_v42 = vrot.slane %v546_v40, 4  ;;  %v584_v43 = vadd.f32 %v583_v41, %v569_v25 }
 0x10e   : > { %v548_v47 = vadd.f32 %v547_v42, %v546_v40  ;;  %v585_v48 = vrot.slane %v584_v43, 4 }
 0x110   : > { %v549_v50 = vrot.slane %v548_v47, 2  ;;  %v586_v52 = vadd.f32 %v585_v48, %v584_v43 }
 0x112   : > { %v550_v53 = vadd.f32 %v549_v50, %v548_v47  ;;  %v587_v56 = vrot.slane %v586_v52, 2 }
 0x114   : > { %v551_v57 = vrot.slane %v550_v53, 1  ;;  %v588_v36 = vadd.f32 %v587_v56, %v586_v52 }
 0x116   : > { %v552_v58 = vadd.f32 %v551_v57, %v550_v53  ;;  %v589_v44 = vrot.slane %v588_v36, 1 }
 0x118   : > { %553 = vst [vmem:[%s211_s13] sm:$0x1] %v552_v58  ;;  %v590_v59 = vadd.f32 %v589_v44, %v588_v36 }
 0x11a   : > { %591 = vst [vmem:[%s211_s13 + $0x1] sm:$0x1] %v590_v59 }
 0x11b PF: > { %s15_s15 = sadd.s32 1, %s787_s15  }
 0x11c   : > { %p12_p5 = scmp.ge.s32.totalorder %s15_s15, 4  }
 0x11e   :  { %14 = sbr.rel (!%p12_p5) target bundleno = 1 (0x1), region = 74 }

// kernel: encoder_dsl_forward.7
= control target key start
LH: loop header
LB: loop body
LE: loop exit
PB: predicated region body
PF: predicated region fallthrough
CT: control target
= control target key end

     0   :  { %s615_s12 = smov 0   ;;  %s742_s0 = inlined_call_operand.vmem [shape: f32[256,128], index: 0, kind: input, shape index: {}]   ;;  %s743_s1 = inlined_call_operand.vmem [shape: f32[128,8], index: 1, kind: input, shape index: {}]   ;;  %s744_s2 = inlined_call_operand.vmem [shape: f32[1,8], index: 2, kind: input, shape index: {}]   ;;  %s745_s3 = inlined_call_operand.vmem [shape: f32[256,8], index: 3, kind: output, shape index: {}]  }
   0x1 LB: > { %s431_s13 = sadd.s32 4294967295, %s593_s12   ;;  %p435_p0 = scmp.ge.s32.totalorder %s593_s12, 1  ;;  %s593_s12 = sphi %s615_s12, %s13_s12  }
   0x2   : > { %p138_p1 = scmp.lt.s32.totalorder %s593_s12, 3 }
   0x4   : > { %p139_p2 = pnand %p435_p0, %p138_p1 }
   0x5   : > { %v190_v0 = vld [vmem:[%s743_s1] sm:$0xff] (!%p139_p2)  ;;  %v191_v1 = vld [vmem:[%s743_s1 + $0x8] sm:$0xff] (!%p139_p2)  ;;  %v192_v2 = vld [vmem:[%s743_s1 + $0x10] sm:$0xff] (!%p139_p2)  ;;  %s436_s20 = sshll.u32 (!%p139_p2), %s431_s13, 4  ;;  %vm358_vm0 = vcmask (!%p139_p2), 64512  }
   0x6   : > { %142 = sbr.rel (%p139_p2) target bundleno = 269 (0x10d), region = 32  ;;  %v531_v3 = vpack.c.bf16 (!%p139_p2), %v191_v1, %v190_v0  ;;  %v193_v4 = vld [vmem:[%s743_s1 + $0x18] sm:$0xff] (!%p139_p2)  ;;  %p163_p3 = scmp.lt.s32.totalorder (!%p139_p2), %s436_s20, 31  ;;  %v194_v6 = vld [vmem:[%s743_s1 + $0x20] sm:$0xff] (!%p139_p2)  ;;  %v195_v7 = vld [vmem:[%s743_s1 + $0x28] sm:$0xff] (!%p139_p2) }
   0x7   : > { %v535_v5 = vpack.c.bf16 (!%p139_p2), %v193_v4, %v192_v2  ;;  %v539_v8 = vpack.c.bf16 (!%p139_p2), %v195_v7, %v194_v6  ;;  %v196_v9 = vld [vmem:[%s743_s1 + $0x30] sm:$0xff] (!%p139_p2)  ;;  %v197_v10 = vld [vmem:[%s743_s1 + $0x38] sm:$0xff] (!%p139_p2)  ;;  %v198_v14 = vld [vmem:[%s743_s1 + $0x40] sm:$0xff] (!%p139_p2) }
   0x8   : > { %532 = vmatprep.subr.bf16.mxu0 (!%p139_p2), %v531_v3  ;;  %563 = vmatprep.subr.bf16.mxu1 (!%p139_p2), %v531_v3  ;;  %v543_v13 = vpack.c.bf16 (!%p139_p2), %v197_v10, %v196_v9  ;;  %v199_v15 = vld [vmem:[%s743_s1 + $0x48] sm:$0xff] (!%p139_p2)  ;;  %v200_v17 = vld [vmem:[%s743_s1 + $0x50] sm:$0xff] (!%p139_p2)  ;;  %v201_v18 = vld [vmem:[%s743_s1 + $0x58] sm:$0xff] (!%p139_p2) }
   0x9   : > { %534 = vmatpush3.bf16.msra.mxu0 (!%p139_p2), %v531_v3  ;;  %571 = vmatpush3.bf16.msra.mxu1 (!%p139_p2), %v531_v3  ;;  %v547_v16 = vpack.c.bf16 (!%p139_p2), %v199_v15, %v198_v14  ;;  %v551_v19 = vpack.c.bf16 (!%p139_p2), %v201_v18, %v200_v17  ;;  %v202_v20 = vld [vmem:[%s743_s1 + $0x60] sm:$0xff] (!%p139_p2)  ;;  %v203_v21 = vld [vmem:[%s743_s1 + $0x68] sm:$0xff] (!%p139_p2)  ;;  %v204_v23 = vld [vmem:[%s743_s1 + $0x70] sm:$0xff] (!%p139_p2) }
   0xa   : > { %536 = vmatprep.subr.bf16.mxu0 (!%p139_p2), %v535_v5  ;;  %564 = vmatprep.subr.bf16.mxu1 (!%p139_p2), %v535_v5  ;;  %v555_v22 = vpack.c.bf16 (!%p139_p2), %v203_v21, %v202_v20  ;;  %v205_v24 = vld [vmem:[%s743_s1 + $0x78] sm:$0xff] (!%p139_p2)  ;;  %v440_v40 = vld [vmem:[%s744_s2] ss:$0 sm:$0xff] (!%p139_p2) }
   0xb   : > { %v559_v25 = vpack.c.bf16 (!%p139_p2), %v205_v24, %v204_v23 }
   0xd   : > { %s747_s20 = smov (!%p163_p3, %s436_s20), 31  ;;  %538 = vmatpush3.bf16.msra.mxu0 %v535_v5  ;;  %572 = vmatpush3.bf16.msra.mxu1 %v535_v5 }
   0xe   : > { %s437_s27 = sshll.u32 %s747_s20, 3  ;;  %540 = vmatprep.subr.bf16.mxu0 %v539_v8  ;;  %565 = vmatprep.subr.bf16.mxu1 %v539_v8 }
   0xf   : > { %s655_s7 = scalar_lea.vmem %s742_s0, %s437_s27  ;;  %s705_s4 = scalar_lea.vmem %s745_s3, %s437_s27 }
  0x10   : > { %v174_v11 = vld [vmem:[%s655_s7] sm:$0xff]  ;;  %v175_v26 = vld [vmem:[%s655_s7 + $0x8] sm:$0xff]  ;;  %v176_v28 = vld [vmem:[%s655_s7 + $0x10] sm:$0xff] }
  0x11   : > { %v182_v12 = vld [vmem:[%s655_s7 + $0x40] sm:$0xff]  ;;  %507 = vmatprep.mubr.f32.mxu0 %v174_v11  ;;  %542 = vmatpush3.bf16.msra.mxu0 %v539_v8  ;;  %v183_v27 = vld [vmem:[%s655_s7 + $0x48] sm:$0xff]  ;;  %v184_v29 = vld [vmem:[%s655_s7 + $0x50] sm:$0xff] }
  0x12   : > { %519 = vmatprep.mubr.f32.mxu1 %v182_v12  ;;  %573 = vmatpush3.bf16.msra.mxu1 %v539_v8  ;;  %v177_v30 = vld [vmem:[%s655_s7 + $0x18] sm:$0xff]  ;;  %v178_v32 = vld [vmem:[%s655_s7 + $0x20] sm:$0xff]  ;;  %v179_v34 = vld [vmem:[%s655_s7 + $0x28] sm:$0xff] }
  0x13   : > { %544 = vmatprep.subr.bf16.mxu0 %v543_v13  ;;  %566 = vmatprep.subr.bf16.mxu1 %v543_v13  ;;  %v185_v31 = vld [vmem:[%s655_s7 + $0x58] sm:$0xff]  ;;  %v186_v33 = vld [vmem:[%s655_s7 + $0x60] sm:$0xff]  ;;  %v187_v35 = vld [vmem:[%s655_s7 + $0x68] sm:$0xff] }
  0x14   : > { %v180_v36 = vld [vmem:[%s655_s7 + $0x30] sm:$0xff]  ;;  %v181_v38 = vld [vmem:[%s655_s7 + $0x38] sm:$0xff] }
  0x15   : > { %546 = vmatpush3.bf16.msra.mxu0 %v543_v13  ;;  %v188_v37 = vld [vmem:[%s655_s7 + $0x70] sm:$0xff]  ;;  %v189_v39 = vld [vmem:[%s655_s7 + $0x78] sm:$0xff] }
  0x16   : > { %574 = vmatpush3.bf16.msra.mxu1 %v543_v13  ;;  %548 = vmatprep.subr.bf16.mxu0 %v547_v16 }
  0x17   : > { %567 = vmatprep.subr.bf16.mxu1 %v547_v16 }
  0x19   : > { %550 = vmatpush3.bf16.msra.mxu0 %v547_v16 }
  0x1a   : > { %575 = vmatpush3.bf16.msra.mxu1 %v547_v16  ;;  %552 = vmatprep.subr.bf16.mxu0 %v551_v19 }
  0x1b   : > { %568 = vmatprep.subr.bf16.mxu1 %v551_v19 }
  0x1d   : > { %554 = vmatpush3.bf16.msra.mxu0 %v551_v19 }
  0x1e   : > { %576 = vmatpush3.bf16.msra.mxu1 %v551_v19  ;;  %556 = vmatprep.subr.bf16.mxu0 %v555_v22 }
  0x1f   : > { %569 = vmatprep.subr.bf16.mxu1 %v555_v22 }
  0x21   : > { %558 = vmatpush3.bf16.msra.mxu0 %v555_v22 }
  0x22   : > { %577 = vmatpush3.bf16.msra.mxu1 %v555_v22  ;;  %560 = vmatprep.subr.bf16.mxu0 %v559_v25 }
  0x23   : > { %570 = vmatprep.subr.bf16.mxu1 %v559_v25 }
  0x25   : > { %562 = vmatpush3.bf16.msra.mxu0 %v559_v25 }
  0x26   : > { %578 = vmatpush3.bf16.msra.mxu1 %v559_v25 }
  0x28   : > { %508 = vmatmul.mubr.f32.vlgmr.msra.gmra.mrb[0].mxu0 %v175_v26 }
  0x29   : > { %520 = vmatmul.mubr.f32.vlgmr.msra.gmra.mrb[0].mxu1 %v183_v27  ;;  %510 = vmatprep.mubr.f32.mxu0 %v176_v28 }
  0x2a   : > { %522 = vmatprep.mubr.f32.mxu1 %v184_v29 }
  0x2c   : > { %511 = vmatmul.mubr.f32.gmra.mrb[2].mxu0 %v177_v30 }
  0x2d   : > { %523 = vmatmul.mubr.f32.gmra.mrb[2].mxu1 %v185_v31  ;;  %513 = vmatprep.mubr.f32.mxu0 %v178_v32 }
  0x2e   : > { %525 = vmatprep.mubr.f32.mxu1 %v186_v33 }
  0x30   : > { %514 = vmatmul.mubr.f32.gmra.mrb[4].mxu0 %v179_v34 }
  0x31   : > { %526 = vmatmul.mubr.f32.gmra.mrb[4].mxu1 %v187_v35  ;;  %516 = vmatprep.mubr.f32.mxu0 %v180_v36 }
  0x32   : > { %528 = vmatprep.mubr.f32.mxu1 %v188_v37 }
  0x34   : > { %517 = vmatmul.mubr.f32.gmra.mrb[6].mxu0 %v181_v38 }
  0x35   : > { %529 = vmatmul.mubr.f32.gmra.mrb[6].mxu1 %v189_v39 }
  0xfb   : > { %v509_v41 = vpop.f32.mrb[0].mxu0 }
  0xfc   : > { %v521_v42 = vpop.f32.mrb[0].mxu1  ;;  %v285_v43 = vadd.f32 %v509_v41, %v440_v40  ;;  %v279_v45 = vpop.f32.mrb[1].mxu0 }
  0xfd   : > { %v325_v44 = vadd.f32 %v521_v42, %v440_v40  ;;  %v319_v46 = vpop.f32.mrb[1].mxu1  ;;  %v280_v47 = vadd.f32 %v440_v40, %v279_v45 }
  0xfe   : > { %v320_v48 = vadd.f32 %v440_v40, %v319_v46  ;;  %360 = vst.msk [vmem:[%s705_s4 + $0x8] sm:$0xff] %vm358_vm0, %v285_v43 }
  0xff   : > { %368 = vst.msk [vmem:[%s705_s4 + $0x48] sm:$0xff] %vm358_vm0, %v325_v44  ;;  %359 = vst.msk [vmem:[%s705_s4] sm:$0xff] %vm358_vm0, %v280_v47  ;;  %v512_v49 = vpop.f32.mrb[2].mxu0 }
 0x100   : > { %367 = vst.msk [vmem:[%s705_s4 + $0x40] sm:$0xff] %vm358_vm0, %v320_v48  ;;  %v524_v50 = vpop.f32.mrb[2].mxu1  ;;  %v295_v51 = vadd.f32 %v512_v49, %v440_v40  ;;  %v289_v53 = vpop.f32.mrb[3].mxu0 }
 0x101   : > { %v335_v52 = vadd.f32 %v524_v50, %v440_v40  ;;  %v329_v54 = vpop.f32.mrb[3].mxu1  ;;  %v290_v55 = vadd.f32 %v440_v40, %v289_v53 }
 0x102   : > { %v330_v56 = vadd.f32 %v440_v40, %v329_v54  ;;  %362 = vst.msk [vmem:[%s705_s4 + $0x18] sm:$0xff] %vm358_vm0, %v295_v51 }
 0x103   : > { %370 = vst.msk [vmem:[%s705_s4 + $0x58] sm:$0xff] %vm358_vm0, %v335_v52  ;;  %361 = vst.msk [vmem:[%s705_s4 + $0x10] sm:$0xff] %vm358_vm0, %v290_v55  ;;  %v515_v57 = vpop.f32.mrb[4].mxu0 }
 0x104   : > { %369 = vst.msk [vmem:[%s705_s4 + $0x50] sm:$0xff] %vm358_vm0, %v330_v56  ;;  %v527_v58 = vpop.f32.mrb[4].mxu1  ;;  %v305_v59 = vadd.f32 %v515_v57, %v440_v40  ;;  %v299_v61 = vpop.f32.mrb[5].mxu0 }
 0x105   : > { %v345_v60 = vadd.f32 %v527_v58, %v440_v40  ;;  %v339_v62 = vpop.f32.mrb[5].mxu1  ;;  %v300_v63 = vadd.f32 %v440_v40, %v299_v61 }
 0x106   : > { %v340_v0 = vadd.f32 %v440_v40, %v339_v62  ;;  %364 = vst.msk [vmem:[%s705_s4 + $0x28] sm:$0xff] %vm358_vm0, %v305_v59 }
 0x107   : > { %372 = vst.msk [vmem:[%s705_s4 + $0x68] sm:$0xff] %vm358_vm0, %v345_v60  ;;  %363 = vst.msk [vmem:[%s705_s4 + $0x20] sm:$0xff] %vm358_vm0, %v300_v63  ;;  %v518_v1 = vpop.f32.mrb[6].mxu0 }
 0x108   : > { %371 = vst.msk [vmem:[%s705_s4 + $0x60] sm:$0xff] %vm358_vm0, %v340_v0  ;;  %v530_v2 = vpop.f32.mrb[6].mxu1  ;;  %v315_v3 = vadd.f32 %v518_v1, %v440_v40  ;;  %v309_v5 = vpop.f32.mrb[7].mxu0 }
 0x109   : > { %v355_v4 = vadd.f32 %v530_v2, %v440_v40  ;;  %v349_v6 = vpop.f32.mrb[7].mxu1  ;;  %v310_v7 = vadd.f32 %v440_v40, %v309_v5 }
 0x10a   : > { %v350_v8 = vadd.f32 %v440_v40, %v349_v6  ;;  %366 = vst.msk [vmem:[%s705_s4 + $0x38] sm:$0xff] %vm358_vm0, %v315_v3 }
 0x10b   : > { %374 = vst.msk [vmem:[%s705_s4 + $0x78] sm:$0xff] %vm358_vm0, %v355_v4  ;;  %365 = vst.msk [vmem:[%s705_s4 + $0x30] sm:$0xff] %vm358_vm0, %v310_v7 }
 0x10c   : > { %373 = vst.msk [vmem:[%s705_s4 + $0x70] sm:$0xff] %vm358_vm0, %v350_v8 }
 0x10d PF: > { %s13_s12 = sadd.s32 1, %s593_s12  }
 0x10e   : > { %p10_p4 = scmp.ge.s32.totalorder %s13_s12, 4  }
 0x110   :  { %12 = sbr.rel (!%p10_p4) target bundleno = 1 (0x1), region = 62 }

// kernel: encoder_dsl_forward.5
= control target key start
LH: loop header
LB: loop body
LE: loop exit
PB: predicated region body
PF: predicated region fallthrough
CT: control target
= control target key end

     0   :  { %s833_s15 = smov 0   ;;  %s1085_s0 = inlined_call_operand.vmem [shape: f32[256,128], index: 0, kind: input, shape index: {}]   ;;  %s1086_s1 = inlined_call_operand.vmem [shape: f32[128,128], index: 1, kind: input, shape index: {}]   ;;  %s1087_s2 = inlined_call_operand.vmem [shape: f32[1,128], index: 2, kind: input, shape index: {}]   ;;  %s1088_s3 = inlined_call_operand.vmem [shape: f32[256,128], index: 3, kind: output, shape index: {0}]   ;;  %s1089_s4 = inlined_call_operand.vmem [shape: f32[2,2,128], index: 4, kind: output, shape index: {1}]  }
   0x1 LB: > { %s839_s16 = sadd.s32 4294967295, %s806_s15   ;;  %p646_p0 = scmp.ge.s32.totalorder %s806_s15, 1  ;;  %s806_s15 = sphi %s833_s15, %s15_s15  }
   0x2   : > { %p166_p1 = scmp.lt.s32.totalorder %s806_s15, 3 }
   0x4   : > { %p167_p2 = pnand %p646_p0, %p166_p1 }
   0x5   : > { %v228_v0 = vld [vmem:[%s1086_s1] sm:$0xff] (!%p167_p2)  ;;  %v229_v1 = vld [vmem:[%s1086_s1 + $0x8] sm:$0xff] (!%p167_p2)  ;;  %v230_v2 = vld [vmem:[%s1086_s1 + $0x10] sm:$0xff] (!%p167_p2)  ;;  %s647_s23 = sshll.u32 (!%p167_p2), %s839_s16, 4  ;;  %v429_v40 = vlaneseq (!%p167_p2)  ;;  %s653_s6 = sshll.u32 (!%p167_p2), %s839_s16, 7 }
   0x6   : > { %170 = sbr.rel (%p167_p2) target bundleno = 305 (0x131), region = 32  ;;  %v744_v3 = vpack.c.bf16 (!%p167_p2), %v229_v1, %v228_v0  ;;  %v231_v4 = vld [vmem:[%s1086_s1 + $0x18] sm:$0xff] (!%p167_p2)  ;;  %p197_p3 = scmp.lt.s32.totalorder (!%p167_p2), %s647_s23, 31  ;;  %v232_v6 = vld [vmem:[%s1086_s1 + $0x20] sm:$0xff] (!%p167_p2)  ;;  %v233_v7 = vld [vmem:[%s1086_s1 + $0x28] sm:$0xff] (!%p167_p2)  ;;  %v922_v43 = vstv (!%p167_p2), %s653_s6 }
   0x7   : > { %v748_v5 = vpack.c.bf16 (!%p167_p2), %v231_v4, %v230_v2  ;;  %v752_v8 = vpack.c.bf16 (!%p167_p2), %v233_v7, %v232_v6  ;;  %v234_v9 = vld [vmem:[%s1086_s1 + $0x30] sm:$0xff] (!%p167_p2)  ;;  %v235_v10 = vld [vmem:[%s1086_s1 + $0x38] sm:$0xff] (!%p167_p2)  ;;  %v236_v14 = vld [vmem:[%s1086_s1 + $0x40] sm:$0xff] (!%p167_p2)  ;;  %v918_v41 = vshrl.u32 (!%p167_p2), %v429_v40, 7  ;;  %p208_p4 = scmp.lt.s32.totalorder (!%p167_p2), %s839_s16, 1 }
   0x8   : > { %745 = vmatprep.subr.bf16.mxu0 (!%p167_p2), %v744_v3  ;;  %776 = vmatprep.subr.bf16.mxu1 (!%p167_p2), %v744_v3  ;;  %v756_v12 = vpack.c.bf16 (!%p167_p2), %v235_v10, %v234_v9  ;;  %v237_v15 = vld [vmem:[%s1086_s1 + $0x48] sm:$0xff] (!%p167_p2)  ;;  %v238_v17 = vld [vmem:[%s1086_s1 + $0x50] sm:$0xff] (!%p167_p2)  ;;  %v239_v18 = vld [vmem:[%s1086_s1 + $0x58] sm:$0xff] (!%p167_p2) }
   0x9   : > { %747 = vmatpush3.bf16.msra.mxu0 (!%p167_p2), %v744_v3  ;;  %784 = vmatpush3.bf16.msra.mxu1 (!%p167_p2), %v744_v3  ;;  %v760_v16 = vpack.c.bf16 (!%p167_p2), %v237_v15, %v236_v14  ;;  %v764_v19 = vpack.c.bf16 (!%p167_p2), %v239_v18, %v238_v17  ;;  %v240_v20 = vld [vmem:[%s1086_s1 + $0x60] sm:$0xff] (!%p167_p2)  ;;  %v241_v21 = vld [vmem:[%s1086_s1 + $0x68] sm:$0xff] (!%p167_p2)  ;;  %v242_v23 = vld [vmem:[%s1086_s1 + $0x70] sm:$0xff] (!%p167_p2)  ;;  %v431_v42 = vadd.s32 (!%p167_p2), 8, %v918_v41  ;;  %v433_v44 = vadd.s32 (!%p167_p2), 24, %v918_v41 }
   0xa   : > { %749 = vmatprep.subr.bf16.mxu0 (!%p167_p2), %v748_v5  ;;  %777 = vmatprep.subr.bf16.mxu1 (!%p167_p2), %v748_v5  ;;  %v768_v22 = vpack.c.bf16 (!%p167_p2), %v241_v21, %v240_v20  ;;  %v243_v24 = vld [vmem:[%s1086_s1 + $0x78] sm:$0xff] (!%p167_p2)  ;;  %v432_v45 = vadd.s32 (!%p167_p2), 16, %v918_v41  ;;  %v447_v47 = vadd.s32 (!%p167_p2), %v922_v43, %v918_v41  ;;  %v435_v48 = vadd.s32 (!%p167_p2), 40, %v918_v41  ;;  %v937_v51 = vld [vmem:[%s1087_s2] ss:$0 sm:$0xff] (!%p167_p2) }
   0xb   : > { %v772_v25 = vpack.c.bf16 (!%p167_p2), %v243_v24, %v242_v23  ;;  %v448_v46 = vadd.s32 (!%p167_p2), %v922_v43, %v431_v42  ;;  %v931_v49 = vadd.s32 (!%p167_p2), %v922_v43, %v433_v44  ;;  %v434_v50 = vadd.s32 (!%p167_p2), 32, %v918_v41 }
   0xc   : > { %v940_v52 = vadd.s32 (!%p167_p2), %v922_v43, %v432_v45  ;;  %v437_v53 = vadd.s32 (!%p167_p2), 56, %v918_v41  ;;  %v436_v54 = vadd.s32 (!%p167_p2), 48, %v918_v41  ;;  %vm463_vm1 = vcmp.lt.s32.totalorder (!%p167_p2), %v447_v47, 200 }
   0xd   : > { %s1091_s23 = smov (!%p197_p3, %s647_s23), 31  ;;  %751 = vmatpush3.bf16.msra.mxu0 %v748_v5  ;;  %785 = vmatpush3.bf16.msra.mxu1 %v748_v5  ;;  %vm464_vm0 = vcmp.lt.s32.totalorder %v448_v46, 200  ;;  %v945_v56 = vadd.s32 %v922_v43, %v435_v48  ;;  %v438_v58 = vadd.s32 64, %v918_v41  ;;  %vm466_vm2 = vcmp.lt.s32.totalorder %v931_v49, 200  ;;  %s1093_s16 = smov (!%p208_p4, %s839_s16), 1 }
   0xe   : > { %s648_s30 = sshll.u32 %s1091_s23, 3  ;;  %753 = vmatprep.subr.bf16.mxu0 %v752_v8  ;;  %778 = vmatprep.subr.bf16.mxu1 %v752_v8  ;;  %v951_v61 = vadd.s32 %v922_v43, %v434_v50  ;;  %vm465_vm3 = vcmp.lt.s32.totalorder %v940_v52, 200  ;;  %v966_v1 = vadd.s32 %v922_v43, %v437_v53  ;;  %v972_v4 = vadd.s32 %v922_v43, %v436_v54  ;;  %s651_s23 = sshll.u32 %s1093_s16, 1 }
   0xf   : > { %s876_s11 = scalar_lea.vmem %s1085_s0, %s648_s30  ;;  %v439_v6 = vadd.s32 72, %v918_v41  ;;  %vm468_vm4 = vcmp.lt.s32.totalorder %v945_v56, 200  ;;  %v979_v10 = vadd.s32 %v922_v43, %v438_v58  ;;  %v440_v20 = vadd.s32 80, %v918_v41  ;;  %s211_s13 = scalar_lea.vmem %s1089_s4, %s651_s23 }
  0x10   : > { %v212_v11 = vld [vmem:[%s876_s11] sm:$0xff]  ;;  %v213_v26 = vld [vmem:[%s876_s11 + $0x8] sm:$0xff]  ;;  %v214_v28 = vld [vmem:[%s876_s11 + $0x10] sm:$0xff]  ;;  %vm467_vm5 = vcmp.lt.s32.totalorder %v951_v61, 200  ;;  %vm470_vm6 = vcmp.lt.s32.totalorder %v966_v1, 200  ;;  %vm469_vm7 = vcmp.lt.s32.totalorder %v972_v4, 200 }
  0x11   : > { %v220_v13 = vld [vmem:[%s876_s11 + $0x40] sm:$0xff]  ;;  %720 = vmatprep.mubr.f32.mxu0 %v212_v11  ;;  %755 = vmatpush3.bf16.msra.mxu0 %v752_v8  ;;  %v221_v27 = vld [vmem:[%s876_s11 + $0x48] sm:$0xff]  ;;  %v222_v29 = vld [vmem:[%s876_s11 + $0x50] sm:$0xff]  ;;  %v1001_v24 = vadd.s32 %v922_v43, %v439_v6  ;;  %vm471_vm8 = vcmp.lt.s32.totalorder %v979_v10, 200  ;;  %v442_v45 = vadd.s32 96, %v918_v41  ;;  %v443_v61 = vadd.s32 104, %v918_v41 }
  0x12   : > { %732 = vmatprep.mubr.f32.mxu1 %v220_v13  ;;  %786 = vmatpush3.bf16.msra.mxu1 %v752_v8  ;;  %v215_v30 = vld [vmem:[%s876_s11 + $0x18] sm:$0xff]  ;;  %v216_v32 = vld [vmem:[%s876_s11 + $0x20] sm:$0xff]  ;;  %v217_v34 = vld [vmem:[%s876_s11 + $0x28] sm:$0xff] }
  0x13   : > { %757 = vmatprep.subr.bf16.mxu0 %v756_v12  ;;  %779 = vmatprep.subr.bf16.mxu1 %v756_v12  ;;  %v223_v31 = vld [vmem:[%s876_s11 + $0x58] sm:$0xff]  ;;  %v224_v33 = vld [vmem:[%s876_s11 + $0x60] sm:$0xff]  ;;  %v225_v35 = vld [vmem:[%s876_s11 + $0x68] sm:$0xff]  ;;  %vm472_vm9 = vcmp.lt.s32.totalorder %v1001_v24, 200  ;;  %v460_v1 = vadd.s32 %v922_v43, %v443_v61 }
  0x14   : > { %v218_v36 = vld [vmem:[%s876_s11 + $0x30] sm:$0xff]  ;;  %v219_v38 = vld [vmem:[%s876_s11 + $0x38] sm:$0xff] }
  0x15   : > { %759 = vmatpush3.bf16.msra.mxu0 %v756_v12  ;;  %v226_v37 = vld [vmem:[%s876_s11 + $0x70] sm:$0xff]  ;;  %v227_v39 = vld [vmem:[%s876_s11 + $0x78] sm:$0xff]  ;;  %s961_s11 = scalar_lea.vmem %s1088_s3, %s648_s30  ;;  %vm476_vm13 = vcmp.lt.s32.totalorder %v460_v1, 200 }
  0x16   : > { %787 = vmatpush3.bf16.msra.mxu1 %v756_v12  ;;  %761 = vmatprep.subr.bf16.mxu0 %v760_v16 }
  0x17   : > { %780 = vmatprep.subr.bf16.mxu1 %v760_v16 }
  0x19   : > { %763 = vmatpush3.bf16.msra.mxu0 %v760_v16 }
  0x1a   : > { %788 = vmatpush3.bf16.msra.mxu1 %v760_v16  ;;  %765 = vmatprep.subr.bf16.mxu0 %v764_v19 }
  0x1b   : > { %781 = vmatprep.subr.bf16.mxu1 %v764_v19 }
  0x1d   : > { %767 = vmatpush3.bf16.msra.mxu0 %v764_v19 }
  0x1e   : > { %789 = vmatpush3.bf16.msra.mxu1 %v764_v19  ;;  %769 = vmatprep.subr.bf16.mxu0 %v768_v22 }
  0x1f   : > { %782 = vmatprep.subr.bf16.mxu1 %v768_v22 }
  0x21   : > { %771 = vmatpush3.bf16.msra.mxu0 %v768_v22 }
  0x22   : > { %790 = vmatpush3.bf16.msra.mxu1 %v768_v22  ;;  %773 = vmatprep.subr.bf16.mxu0 %v772_v25 }
  0x23   : > { %783 = vmatprep.subr.bf16.mxu1 %v772_v25 }
  0x25   : > { %775 = vmatpush3.bf16.msra.mxu0 %v772_v25 }
  0x26   : > { %791 = vmatpush3.bf16.msra.mxu1 %v772_v25 }
  0x28   : > { %721 = vmatmul.mubr.f32.vlgmr.msra.gmra.mrb[0].mxu0 %v213_v26 }
  0x29   : > { %733 = vmatmul.mubr.f32.vlgmr.msra.gmra.mrb[0].mxu1 %v221_v27  ;;  %723 = vmatprep.mubr.f32.mxu0 %v214_v28 }
  0x2a   : > { %735 = vmatprep.mubr.f32.mxu1 %v222_v29 }
  0x2c   : > { %724 = vmatmul.mubr.f32.gmra.mrb[2].mxu0 %v215_v30 }
  0x2d   : > { %736 = vmatmul.mubr.f32.gmra.mrb[2].mxu1 %v223_v31  ;;  %726 = vmatprep.mubr.f32.mxu0 %v216_v32 }
  0x2e   : > { %738 = vmatprep.mubr.f32.mxu1 %v224_v33  ;;  %v441_v33 = vadd.s32 88, %v918_v41 }
  0x30   : > { %727 = vmatmul.mubr.f32.gmra.mrb[4].mxu0 %v217_v34 }
  0x31   : > { %739 = vmatmul.mubr.f32.gmra.mrb[4].mxu1 %v225_v35  ;;  %729 = vmatprep.mubr.f32.mxu0 %v218_v36 }
  0x32   : > { %741 = vmatprep.mubr.f32.mxu1 %v226_v37 }
  0x34   : > { %730 = vmatmul.mubr.f32.gmra.mrb[6].mxu0 %v219_v38 }
  0x35   : > { %742 = vmatmul.mubr.f32.gmra.mrb[6].mxu1 %v227_v39  ;;  %v457_v39 = vadd.s32 %v922_v43, %v440_v20 }
  0x37   : > { %vm473_vm10 = vcmp.lt.s32.totalorder %v457_v39, 200 }
  0xfb   : > { %v722_v55 = vpop.f32.mrb[0].mxu0 }
  0xfc   : > { %v734_v57 = vpop.f32.mrb[0].mxu1  ;;  %v323_v59 = vadd.f32 %v722_v55, %v937_v51  ;;  %v317_v60 = vpop.f32.mrb[1].mxu0 }
  0xfd   : > { %v954_v62 = vadd.f32 %v734_v57, %v937_v51  ;;  %v357_v63 = vpop.f32.mrb[1].mxu1  ;;  %v318_v0 = vadd.f32 %v937_v51, %v317_v60 }
  0xfe   : > { %v969_v2 = vadd.f32 %v937_v51, %v357_v63  ;;  %v397_v3 = vmax.f32 %v323_v59, 0.0 }
  0xff   : > { %v405_v5 = vmax.f32 %v954_v62, 0.0  ;;  %v396_v7 = vmax.f32 %v318_v0, 0.0  ;;  %v725_v8 = vpop.f32.mrb[2].mxu0 }
 0x100   : > { %v404_v9 = vmax.f32 %v969_v2, 0.0  ;;  %v737_v11 = vpop.f32.mrb[2].mxu1  ;;  %413 = vst [vmem:[%s961_s11 + $0x8] sm:$0xff] %v397_v3  ;;  %v480_v12 = vsel %vm464_vm0, %v397_v3, 0.0  ;;  %v333_v13 = vadd.f32 %v725_v8, %v937_v51  ;;  %v327_v14 = vpop.f32.mrb[3].mxu0  ;;  %v458_v3 = vadd.s32 %v922_v43, %v441_v33 }
 0x101   : > { %421 = vst [vmem:[%s961_s11 + $0x48] sm:$0xff] %v405_v5  ;;  %v989_v15 = vadd.f32 %v737_v11, %v937_v51  ;;  %v367_v16 = vpop.f32.mrb[3].mxu1  ;;  %v518_v17 = vmul.f32 %v480_v12, %v480_v12  ;;  %412 = vst [vmem:[%s961_s11] sm:$0xff] %v396_v7  ;;  %v479_v18 = vsel %vm463_vm1, %v396_v7, 0.0  ;;  %v328_v19 = vadd.f32 %v937_v51, %v327_v14 }
 0x102   : > { %420 = vst [vmem:[%s961_s11 + $0x40] sm:$0xff] %v404_v9  ;;  %v495_v21 = vadd.f32 %v480_v12, %v479_v18  ;;  %v517_v22 = vmul.f32 %v479_v18, %v479_v18  ;;  %v399_v23 = vmax.f32 %v333_v13, 0.0  ;;  %v1006_v28 = vadd.f32 %v937_v51, %v367_v16 }
 0x103   : > { %v398_v25 = vmax.f32 %v328_v19, 0.0  ;;  %v728_v26 = vpop.f32.mrb[4].mxu0  ;;  %v407_v27 = vmax.f32 %v989_v15, 0.0  ;;  %v487_v20 = vsel %vm471_vm8, %v404_v9, 0.0  ;;  %vm474_vm11 = vcmp.lt.s32.totalorder %v458_v3, 200 }
 0x104   : > { %v740_v29 = vpop.f32.mrb[4].mxu1  ;;  %v533_v30 = vadd.f32 %v518_v17, %v517_v22  ;;  %415 = vst [vmem:[%s961_s11 + $0x18] sm:$0xff] %v399_v23  ;;  %v343_v31 = vadd.f32 %v728_v26, %v937_v51  ;;  %v337_v32 = vpop.f32.mrb[5].mxu0  ;;  %v482_v36 = vsel %vm466_vm2, %v399_v23, 0.0  ;;  %v406_v48 = vmax.f32 %v1006_v28, 0.0 }
 0x105   : > { %v1012_v34 = vadd.f32 %v740_v29, %v937_v51  ;;  %v377_v35 = vpop.f32.mrb[5].mxu1  ;;  %414 = vst [vmem:[%s961_s11 + $0x10] sm:$0xff] %v398_v25  ;;  %v481_v37 = vsel %vm465_vm3, %v398_v25, 0.0  ;;  %v338_v38 = vadd.f32 %v937_v51, %v337_v32  ;;  %423 = vst [vmem:[%s961_s11 + $0x58] sm:$0xff] %v407_v27  ;;  %v520_v53 = vmul.f32 %v482_v36, %v482_v36 }
 0x106   : > { %v496_v40 = vadd.f32 %v495_v21, %v481_v37  ;;  %v519_v42 = vmul.f32 %v481_v37, %v481_v37  ;;  %v401_v44 = vmax.f32 %v343_v31, 0.0  ;;  %v1029_v50 = vadd.f32 %v937_v51, %v377_v35  ;;  %422 = vst [vmem:[%s961_s11 + $0x50] sm:$0xff] %v406_v48 }
 0x107   : > { %v400_v46 = vmax.f32 %v338_v38, 0.0  ;;  %v731_v47 = vpop.f32.mrb[6].mxu0  ;;  %v409_v49 = vmax.f32 %v1012_v34, 0.0  ;;  %v459_v17 = vadd.s32 %v922_v43, %v442_v45  ;;  %v444_v26 = vadd.s32 112, %v918_v41 }
 0x108   : > { %v743_v52 = vpop.f32.mrb[6].mxu1  ;;  %v534_v54 = vadd.f32 %v533_v30, %v519_v42  ;;  %417 = vst [vmem:[%s961_s11 + $0x28] sm:$0xff] %v401_v44  ;;  %v497_v55 = vadd.f32 %v496_v40, %v482_v36  ;;  %v353_v57 = vadd.f32 %v731_v47, %v937_v51  ;;  %v347_v58 = vpop.f32.mrb[7].mxu0  ;;  %v484_v60 = vsel %vm468_vm4, %v401_v44, 0.0 }
 0x109   : > { %v387_v59 = vpop.f32.mrb[7].mxu1  ;;  %416 = vst [vmem:[%s961_s11 + $0x20] sm:$0xff] %v400_v46  ;;  %v483_v63 = vsel %vm467_vm5, %v400_v46, 0.0  ;;  %v348_v0 = vadd.f32 %v937_v51, %v347_v58  ;;  %425 = vst [vmem:[%s961_s11 + $0x68] sm:$0xff] %v409_v49  ;;  %v408_v12 = vmax.f32 %v1029_v50, 0.0  ;;  %v522_v13 = vmul.f32 %v484_v60, %v484_v60 }
 0x10a   : > { %v498_v6 = vadd.f32 %v497_v55, %v483_v63  ;;  %v521_v7 = vmul.f32 %v483_v63, %v483_v63  ;;  %v535_v8 = vadd.f32 %v534_v54, %v520_v53  ;;  %v403_v56 = vmax.f32 %v353_v57, 0.0 }
 0x10b   : > { %v402_v11 = vmax.f32 %v348_v0, 0.0  ;;  %424 = vst [vmem:[%s961_s11 + $0x60] sm:$0xff] %v408_v12  ;;  %v393_v21 = vadd.f32 %v743_v52, %v937_v51  ;;  %v388_v28 = vadd.f32 %v937_v51, %v387_v59  ;;  %v525_v9 = vmul.f32 %v487_v20, %v487_v20 }
 0x10c   : > { %v536_v14 = vadd.f32 %v535_v8, %v521_v7  ;;  %419 = vst [vmem:[%s961_s11 + $0x38] sm:$0xff] %v403_v56  ;;  %v499_v16 = vadd.f32 %v498_v6, %v484_v60  ;;  %v486_v18 = vsel %vm470_vm6, %v403_v56, 0.0  ;;  %v488_v30 = vsel %vm472_vm9, %v405_v5, 0.0 }
 0x10d   : > { %418 = vst [vmem:[%s961_s11 + $0x30] sm:$0xff] %v402_v11  ;;  %v485_v19 = vsel %vm469_vm7, %v402_v11, 0.0  ;;  %v411_v4 = vmax.f32 %v393_v21, 0.0  ;;  %v524_v2 = vmul.f32 %v486_v18, %v486_v18  ;;  %v489_v31 = vsel %vm473_vm10, %v406_v48, 0.0 }
 0x10e   : > { %v500_v22 = vadd.f32 %v499_v16, %v485_v19  ;;  %v523_v23 = vmul.f32 %v485_v19, %v485_v19  ;;  %v537_v25 = vadd.f32 %v536_v14, %v522_v13  ;;  %vm475_vm12 = vcmp.lt.s32.totalorder %v459_v17, 200 }
 0x10f   : > { %427 = vst [vmem:[%s961_s11 + $0x78] sm:$0xff] %v411_v4  ;;  %v410_v32 = vmax.f32 %v388_v28, 0.0  ;;  %v445_v36 = vadd.s32 120, %v918_v41  ;;  %v461_v51 = vadd.s32 %v922_v43, %v444_v26  ;;  %v526_v37 = vmul.f32 %v488_v30, %v488_v30 }
 0x110   : > { %v538_v29 = vadd.f32 %v537_v25, %v523_v23  ;;  %v501_v10 = vadd.f32 %v500_v22, %v486_v18  ;;  %v527_v42 = vmul.f32 %v489_v31, %v489_v31  ;;  %v490_v62 = vsel %vm474_vm11, %v407_v27, 0.0 }
 0x111   : > { %426 = vst [vmem:[%s961_s11 + $0x70] sm:$0xff] %v410_v32  ;;  %v491_v5 = vsel %vm475_vm12, %v408_v12, 0.0  ;;  %v462_v44 = vadd.s32 %v922_v43, %v445_v36  ;;  %vm477_vm14 = vcmp.lt.s32.totalorder %v461_v51, 200  ;;  %v528_v45 = vmul.f32 %v490_v62, %v490_v62 }
 0x112   : > { %v502_v33 = vadd.f32 %v501_v10, %v487_v20  ;;  %v539_v35 = vadd.f32 %v538_v29, %v524_v2  ;;  %v529_v47 = vmul.f32 %v491_v5, %v491_v5  ;;  %v492_v48 = vsel %vm476_vm13, %v409_v49, 0.0 }
 0x113   : > { %v493_v50 = vsel %vm477_vm14, %v410_v32, 0.0  ;;  %vm478_vm15 = vcmp.lt.s32.totalorder %v462_v44, 200  ;;  %v530_v27 = vmul.f32 %v492_v48, %v492_v48 }
 0x114   : > { %v540_v38 = vadd.f32 %v539_v35, %v525_v9  ;;  %v503_v40 = vadd.f32 %v502_v33, %v488_v30  ;;  %v531_v55 = vmul.f32 %v493_v50, %v493_v50  ;;  %v494_v57 = vsel %vm478_vm15, %v411_v4, 0.0 }
 0x115   : > { %v532_v59 = vmul.f32 %v494_v57, %v494_v57 }
 0x116   : > { %v504_v24 = vadd.f32 %v503_v40, %v489_v31  ;;  %v541_v39 = vadd.f32 %v540_v38, %v526_v37 }
 0x118   : > { %v542_v41 = vadd.f32 %v541_v39, %v527_v42  ;;  %v505_v46 = vadd.f32 %v504_v24, %v490_v62 }
 0x11a   : > { %v506_v52 = vadd.f32 %v505_v46, %v491_v5  ;;  %v543_v15 = vadd.f32 %v542_v41, %v528_v45 }
 0x11c   : > { %v544_v53 = vadd.f32 %v543_v15, %v529_v47  ;;  %v507_v54 = vadd.f32 %v506_v52, %v492_v48 }
 0x11e   : > { %v508_v43 = vadd.f32 %v507_v54, %v493_v50  ;;  %v545_v58 = vadd.f32 %v544_v53, %v530_v27 }
 0x120   : > { %v509_v60 = vadd.f32 %v508_v43, %v494_v57  ;;  %v546_v63 = vadd.f32 %v545_v58, %v531_v55 }
 0x122   : > { %v510_v0 = vrot.slane %v509_v60, 4  ;;  %v547_v3 = vadd.f32 %v546_v63, %v532_v59 }
 0x124   : > { %v511_v34 = vadd.f32 %v510_v0, %v509_v60  ;;  %v548_v49 = vrot.slane %v547_v3, 4 }
 0x126   : > { %v512_v6 = vrot.slane %v511_v34, 2  ;;  %v549_v7 = vadd.f32 %v548_v49, %v547_v3 }
 0x128   : > { %v513_v8 = vadd.f32 %v512_v6, %v511_v34  ;;  %v550_v56 = vrot.slane %v549_v7, 2 }
 0x12a   : > { %v514_v11 = vrot.slane %v513_v8, 1  ;;  %v551_v61 = vadd.f32 %v550_v56, %v549_v7 }
 0x12c   : > { %v515_v12 = vadd.f32 %v514_v11, %v513_v8  ;;  %v552_v13 = vrot.slane %v551_v61, 1 }
 0x12e   : > { %516 = vst [vmem:[%s211_s13] sm:$0x1] %v515_v12  ;;  %v553_v14 = vadd.f32 %v552_v13, %v551_v61 }
 0x130   : > { %554 = vst [vmem:[%s211_s13 + $0x1] sm:$0x1] %v553_v14 }
 0x131 PF: > { %s15_s15 = sadd.s32 1, %s806_s15  }
 0x132   : > { %p12_p5 = scmp.ge.s32.totalorder %s15_s15, 4  }
 0x134   :  { %14 = sbr.rel (!%p12_p5) target bundleno = 1 (0x1), region = 74 }

</bundles_post_ra>
